<compile_context>
chip_gen: v7x
topology: tpu7x:2x2x1
jax: 0.10.0
libtpu: 0.0.40
codegen_flags: <defaults>
</compile_context>

<pallas_src>
from functools import partial

import jax
import jax.numpy as jnp
from jax.experimental import pallas as pl
from jax.experimental.pallas import tpu as pltpu

LEAKY_SLOPE = 0.01
BN_EPS = 1e-5
HALO = 128          # lane-aligned halo width; only K-1 = 39 columns are used


def _round_up(v, m):
    return ((v + m - 1) // m) * m


# ---------------------------------------------------------------------------
# Pass 1: fused dual-conv (one matmul) + per-tile channel sum / sum-of-squares
# ---------------------------------------------------------------------------
def _make_conv_stats_kernel(K, C8, Lt, L_valid):
    def kernel(x_ref, xhalo_ref, w_ref, y_ref, stats_ref, win_ref):
        # x_ref:     (C8, Lt)     current L tile of the padded input
        # xhalo_ref: (C8, 128)    first 128 columns of the next tile (K-1=39 used)
        # w_ref:     (2*O, K*C8)  fused tap-stacked weights (grid-invariant block)
        # y_ref:     (2*O, Lt)    pre-BN conv output (NCL layout, L on lanes)
        # stats_ref: (2*O, 2)     per-tile [sum, sum_sq] per channel
        # win_ref:   (K*C8, Lt)   VMEM scratch: tap-stacked im2col window
        x_ext = jnp.concatenate([x_ref[...], xhalo_ref[...]], axis=1)  # (C8, Lt+128)

        # im2col: row (k*C8 + c), col j  ==  x_pad[c, tile_start + j + k].
        # Stores are sublane-aligned (k*C8 is a multiple of 8); the lane-offset
        # slices use the otherwise mostly idle XLU.
        for k in range(K):
            win_ref[k * C8:(k + 1) * C8, :] = x_ext[:, k:k + Lt]

        # One MXU matmul, contraction depth K*C8 (=320 for C8=8); the output is
        # kept lane-dense ((2*O, Lt), L on lanes -> unmasked stores).
        # Operand-order note: with only 2*O (<=16) output channels the MXU cost
        # is ~ceil(K*C8/256)*Lt cycles regardless of which operand is the
        # stationary RHS; swapping so the constant weights become the RHS would
        # also require a per-tile (Lt, 2*O) -> (2*O, Lt) transpose (or a
        # transposed-LHS dot), so the proven (w @ win) form is kept.
        y = jnp.dot(w_ref[...], win_ref[...], preferred_element_type=jnp.float32)
        y_ref[...] = y

        # Partial BatchNorm statistics, masked to the valid (un-padded) columns.
        lt = pl.program_id(1)
        col = jax.lax.broadcasted_iota(jnp.int32, (1, Lt), 1) + lt * Lt
        ym = jnp.where(col < L_valid, y, 0.0)
        s = jnp.sum(ym, axis=1, keepdims=True)                  # (2*O, 1)
        ss = jnp.sum(ym * ym, axis=1, keepdims=True)            # (2*O, 1)
        stats_ref[...] = jnp.concatenate([s, ss], axis=1)       # (2*O, 2)

    return kernel


# ---------------------------------------------------------------------------
# Pass 2: y * scale + shift then LeakyReLU (scale/shift fold BN mean/var/affine)
# ---------------------------------------------------------------------------
def _bn_act_kernel(y_ref, scale_ref, shift_ref, out_ref):
    z = y_ref[...] * scale_ref[...] + shift_ref[...]            # lane-broadcast
    out_ref[...] = jnp.where(z > 0, z, LEAKY_SLOPE * z)


@partial(jax.jit, static_argnames=("lt_cap",))
def parallel_convolutions(x_ncl, w_large, w_medium, gamma, beta, *, lt_cap=None):
    """x_ncl:    (N, C_in, L)       (PyTorch NCL layout)
       w_large:  (C_out, C_in, 40)  (PyTorch Conv1d weight layout)
       w_medium: (C_out, C_in, 20)
       gamma, beta: (2*C_out,)
       returns (N, 2*C_out, L) float32 matching the PyTorch module (training
       mode, batch statistics).  lt_cap: optional test hook to force small
       L tiles (exercises the multi-tile / halo path)."""
    N, C, L = x_ncl.shape
    O = w_large.shape[0]
    KL = w_large.shape[2]                       # 40
    KM = w_medium.shape[2]                      # 20
    two_O = 2 * O

    # PyTorch padding='same' (stride 1): left = (K-1)//2, right = K-1-left.
    padL_left = (KL - 1) // 2                   # 19
    padM_left = (KM - 1) // 2                   # 9
    offM = padL_left - padM_left                # medium tap k' sits at tap k'+offM
    assert 0 <= offM and offM + KM <= KL
    assert KL - 1 <= HALO                       # halo block covers the lookahead

    C8 = _round_up(C, 8)

    # ------- generation-aware tile sizing (v7x: 64 MiB VMEM; v5e/v6e: 128) -------
    try:
        info = pltpu.get_tpu_info()
        vmem_cap = int(getattr(info, "vmem_capacity_bytes", 64 << 20))
    except Exception:
        vmem_cap = 64 << 20                     # conservative (v7x per-TC)
    vmem_limit = int(min(vmem_cap * 3 // 4, 96 << 20))
    tile_budget = min(vmem_limit // 2, 24 << 20)
    # f32 bytes per L column: win scratch + double-buffered x in + y out.
    per_col = 4 * (KL * C8 + 2 * C8 + 2 * two_O)
    fixed = 4 * (2 * C8 * HALO + 2 * two_O * KL * C8)
    lt_budget = max(128, ((tile_budget - fixed) // per_col) // 128 * 128)
    Lt = min(2048, _round_up(L, 128), lt_budget)
    if lt_cap is not None:
        Lt = min(Lt, max(128, _round_up(lt_cap, 128)))

    G_l = -(-L // Lt)                           # number of L tiles
    Lpad = G_l * Lt + HALO                      # one lane-aligned halo block of slack

    # ONE padded input shared by both convs (no transpose, single jnp.pad).
    x_pad = jnp.pad(x_ncl.astype(jnp.float32),
                    ((0, 0), (0, C8 - C), (padL_left, Lpad - padL_left - L)))

    # Fused, tap-stacked weight: (2*O, KL*C8); the medium conv occupies taps
    # [offM, offM+KM) of the large conv's tap grid, padded channels are zero.
    wL = jnp.transpose(w_large, (2, 1, 0)).astype(jnp.float32)   # (KL, C, O)
    wM = jnp.transpose(w_medium, (2, 1, 0)).astype(jnp.float32)  # (KM, C, O)
    w_full = jnp.zeros((KL, C8, two_O), jnp.float32)
    w_full = w_full.at[:, :C, :O].set(wL)
    w_full = w_full.at[offM:offM + KM, :C, O:].set(wM)
    w2d = jnp.transpose(w_full.reshape(KL * C8, two_O))          # (2*O, KL*C8)

    cparams = pltpu.CompilerParams(
        dimension_semantics=("parallel", "parallel"),   # megacore-friendly (v7x)
        vmem_limit_bytes=vmem_limit)

    halo_blocks = Lt // HALO

    # ------------------- pass 1: conv + partial BN stats -------------------
    conv_kernel = _make_conv_stats_kernel(KL, C8, Lt, L)
    y, stats = pl.pallas_call(
        conv_kernel,
        grid=(N, G_l),
        in_specs=[
            pl.BlockSpec((None, C8, Lt), lambda n, lt: (n, 0, lt)),          # current
            pl.BlockSpec((None, C8, HALO),                                   # 128-lane halo
                         lambda n, lt: (n, 0, (lt + 1) * halo_blocks)),
            pl.BlockSpec((two_O, KL * C8), lambda n, lt: (0, 0)),            # weights
        ],
        out_specs=(
            pl.BlockSpec((None, two_O, Lt), lambda n, lt: (n, 0, lt)),
            pl.BlockSpec((None, None, two_O, 2), lambda n, lt: (n, lt, 0, 0)),
        ),
        out_shape=(
            jax.ShapeDtypeStruct((N, two_O, G_l * Lt), jnp.float32),
            jax.ShapeDtypeStruct((N, G_l, two_O, 2), jnp.float32),
        ),
        scratch_shapes=[pltpu.VMEM((KL * C8, Lt), jnp.float32)],
        compiler_params=cparams,
    )(x_pad, x_pad, w2d)

    # ------------- BN statistics -> per-channel scale / shift -------------
    cnt = float(N * L)
    s = jnp.sum(stats[..., 0], axis=(0, 1))                      # (2*O,)
    ss = jnp.sum(stats[..., 1], axis=(0, 1))
    mean = s / cnt
    var = jnp.maximum(ss / cnt - mean * mean, 0.0)               # biased (train) var
    inv_std = jax.lax.rsqrt(var + BN_EPS)
    scale = gamma.astype(jnp.float32) * inv_std
    shift = beta.astype(jnp.float32) - mean * scale
    # TODO(synk): BatchNorm1d running_mean/running_var buffer updates (training
    # side effect) are not produced; the forward output does not depend on them.

    # --------- pass 2: normalize + affine + LeakyReLU (coarse, in place) ---------
    blk_bytes = two_O * Lt * 4
    k2 = max(1, min(G_l, (4 << 20) // max(blk_bytes, 1)))        # tiles per block
    while G_l % k2:                                              # keep it dividing G_l
        k2 -= 1
    Lt2 = Lt * k2
    G_l2 = G_l // k2

    out_pad = pl.pallas_call(
        _bn_act_kernel,
        grid=(N, G_l2),
        in_specs=[
            pl.BlockSpec((None, two_O, Lt2), lambda n, lt: (n, 0, lt)),
            pl.BlockSpec((two_O, 1), lambda n, lt: (0, 0)),
            pl.BlockSpec((two_O, 1), lambda n, lt: (0, 0)),
        ],
        out_specs=pl.BlockSpec((None, two_O, Lt2), lambda n, lt: (n, 0, lt)),
        out_shape=jax.ShapeDtypeStruct((N, two_O, G_l * Lt), jnp.float32),
        input_output_aliases={0: 0},                             # write in place over y
        compiler_params=cparams,
    )(y, scale.reshape(two_O, 1), shift.reshape(two_O, 1))

    # Output is already NCL; this slice is a no-op when L % Lt == 0.
    return out_pad[:, :, :L]


# ----------------------- pure-JAX reference (for sanity) -----------------------
def _reference(x_ncl, w_large, w_medium, gamma, beta):
    def conv_same(x, w):
        k = w.shape[2]
        pad = ((k - 1) // 2, (k - 1) - (k - 1) // 2)
        return jax.lax.conv_general_dilated(
            x, w, window_strides=(1,), padding=[pad],
            dimension_numbers=('NCH', 'OIH', 'NCH'))
    y = jnp.concatenate([conv_same(x_ncl, w_large),
                         conv_same(x_ncl, w_medium)], axis=1)
    mean = jnp.mean(y, axis=(0, 2), keepdims=True)
    var = jnp.mean((y - mean) ** 2, axis=(0, 2), keepdims=True)
    y = (y - mean) * jax.lax.rsqrt(var + BN_EPS)
    y = y * gamma.reshape(1, -1, 1) + beta.reshape(1, -1, 1)
    return jnp.where(y > 0, y, LEAKY_SLOPE * y)


if __name__ == "__main__":
    def run_case(key, N, C_in, C_out, L, lt_cap=None):
        k_x, k_wl, k_wm, k_g, k_b = jax.random.split(key, 5)
        x = jax.random.normal(k_x, (N, C_in, L), jnp.float32)
        w_large = jax.random.normal(k_wl, (C_out, C_in, 40), jnp.float32) * 0.1
        w_medium = jax.random.normal(k_wm, (C_out, C_in, 20), jnp.float32) * 0.1
        gamma = 1.0 + 0.1 * jax.random.normal(k_g, (2 * C_out,), jnp.float32)
        beta = 0.1 * jax.random.normal(k_b, (2 * C_out,), jnp.float32)

        out = jax.block_until_ready(
            parallel_convolutions(x, w_large, w_medium, gamma, beta, lt_cap=lt_cap))
        ref = _reference(x, w_large, w_medium, gamma, beta)
        assert out.shape == (N, 2 * C_out, L), out.shape
        err = float(jnp.max(jnp.abs(out - ref)))
        assert jnp.allclose(out, ref, atol=1e-4, rtol=1e-4), err

    key = jax.random.PRNGKey(0)
    k1, k2, k3 = jax.random.split(key, 3)
    # small shapes matching the module (single tile)
    run_case(k1, N=2, C_in=4, C_out=8, L=64)
    # forced multi-tile + ragged last tile + channel padding (halo & masking path)
    run_case(k2, N=3, C_in=5, C_out=6, L=700, lt_cap=256)
    # default (large-tile) path for the same ragged length
    run_case(k3, N=2, C_in=4, C_out=8, L=700)
    print("KERNEL_OK")
</pallas_src>

<mosaic_0001>
module attributes {stable_mosaic.version = 11 : i64} {
  func.func @kernel(%arg0: i32, %arg1: i32, %arg2: memref<1x8x128xf32, #tpu.memory_space<vmem>>, %arg3: memref<1x8x128xf32, #tpu.memory_space<vmem>>, %arg4: memref<16x320xf32, #tpu.memory_space<vmem>>, %arg5: memref<1x16x128xf32, #tpu.memory_space<vmem>>, %arg6: memref<1x1x16x2xf32, #tpu.memory_space<vmem>>, %arg7: memref<320x128xf32, #tpu.memory_space<vmem>>) attributes {dimension_semantics = [#tpu.dimension_semantics<parallel>, #tpu.dimension_semantics<parallel>], iteration_bounds = array<i64: 2, 1>, scalar_prefetch = 0 : i64, scratch_operands = 1 : i64, tpu.core_type = #tpu.core_type<tc>, window_params = [{transform_indices = @transform_0, window_bounds = array<i64: 1, 8, 128>}, {transform_indices = @transform_1, window_bounds = array<i64: 1, 8, 128>}, {pipeline_mode = #tpu.pipeline_mode<synchronous>, transform_indices = @transform_2, window_bounds = array<i64: 16, 320>}, {transform_indices = @transform_3, window_bounds = array<i64: 1, 16, 128>}, {transform_indices = @transform_4, window_bounds = array<i64: 1, 1, 16, 2>}]} {
    %c0 = arith.constant 0 : index
    %c0_0 = arith.constant 0 : index
    %c0_1 = arith.constant 0 : index
    %0 = vector.load %arg2[%c0, %c0_0, %c0_1] : memref<1x8x128xf32, #tpu.memory_space<vmem>>, vector<1x8x128xf32>
    %1 = vector.shape_cast %0 : vector<1x8x128xf32> to vector<8x128xf32>
    %c0_2 = arith.constant 0 : index
    %c0_3 = arith.constant 0 : index
    %c0_4 = arith.constant 0 : index
    %2 = vector.load %arg3[%c0_2, %c0_3, %c0_4] : memref<1x8x128xf32, #tpu.memory_space<vmem>>, vector<1x8x128xf32>
    %3 = vector.shape_cast %2 : vector<1x8x128xf32> to vector<8x128xf32>
    %4 = tpu.concatenate %1, %3 in 1 : vector<8x128xf32>, vector<8x128xf32> -> vector<8x256xf32>
    %5 = vector.extract_strided_slice %4 {offsets = [0, 0], sizes = [8, 128], strides = [1, 1]} : vector<8x256xf32> to vector<8x128xf32>
    %c0_5 = arith.constant 0 : index
    %c0_6 = arith.constant 0 : index
    %6 = vector.load %arg7[%c0_5, %c0_6] : memref<320x128xf32, #tpu.memory_space<vmem>>, vector<8x128xf32>
    tpu.vector_store %arg7[%c0_5, %c0_6], %5 {strides = array<i32>} : memref<320x128xf32, #tpu.memory_space<vmem>>, vector<8x128xf32>,
    %7 = vector.extract_strided_slice %4 {offsets = [0, 1], sizes = [8, 128], strides = [1, 1]} : vector<8x256xf32> to vector<8x128xf32>
    %c8 = arith.constant 8 : index
    %c0_7 = arith.constant 0 : index
    %8 = vector.load %arg7[%c8, %c0_7] : memref<320x128xf32, #tpu.memory_space<vmem>>, vector<8x128xf32>
    tpu.vector_store %arg7[%c8, %c0_7], %7 {strides = array<i32>} : memref<320x128xf32, #tpu.memory_space<vmem>>, vector<8x128xf32>,
    %9 = vector.extract_strided_slice %4 {offsets = [0, 2], sizes = [8, 128], strides = [1, 1]} : vector<8x256xf32> to vector<8x128xf32>
    %c16 = arith.constant 16 : index
    %c0_8 = arith.constant 0 : index
    %10 = vector.load %arg7[%c16, %c0_8] : memref<320x128xf32, #tpu.memory_space<vmem>>, vector<8x128xf32>
    tpu.vector_store %arg7[%c16, %c0_8], %9 {strides = array<i32>} : memref<320x128xf32, #tpu.memory_space<vmem>>, vector<8x128xf32>,
    %11 = vector.extract_strided_slice %4 {offsets = [0, 3], sizes = [8, 128], strides = [1, 1]} : vector<8x256xf32> to vector<8x128xf32>
    %c24 = arith.constant 24 : index
    %c0_9 = arith.constant 0 : index
    %12 = vector.load %arg7[%c24, %c0_9] : memref<320x128xf32, #tpu.memory_space<vmem>>, vector<8x128xf32>
    tpu.vector_store %arg7[%c24, %c0_9], %11 {strides = array<i32>} : memref<320x128xf32, #tpu.memory_space<vmem>>, vector<8x128xf32>,
    %13 = vector.extract_strided_slice %4 {offsets = [0, 4], sizes = [8, 128], strides = [1, 1]} : vector<8x256xf32> to vector<8x128xf32>
    %c32 = arith.constant 32 : index
    %c0_10 = arith.constant 0 : index
    %14 = vector.load %arg7[%c32, %c0_10] : memref<320x128xf32, #tpu.memory_space<vmem>>, vector<8x128xf32>
    tpu.vector_store %arg7[%c32, %c0_10], %13 {strides = array<i32>} : memref<320x128xf32, #tpu.memory_space<vmem>>, vector<8x128xf32>,
    %15 = vector.extract_strided_slice %4 {offsets = [0, 5], sizes = [8, 128], strides = [1, 1]} : vector<8x256xf32> to vector<8x128xf32>
    %c40 = arith.constant 40 : index
    %c0_11 = arith.constant 0 : index
    %16 = vector.load %arg7[%c40, %c0_11] : memref<320x128xf32, #tpu.memory_space<vmem>>, vector<8x128xf32>
    tpu.vector_store %arg7[%c40, %c0_11], %15 {strides = array<i32>} : memref<320x128xf32, #tpu.memory_space<vmem>>, vector<8x128xf32>,
    %17 = vector.extract_strided_slice %4 {offsets = [0, 6], sizes = [8, 128], strides = [1, 1]} : vector<8x256xf32> to vector<8x128xf32>
    %c48 = arith.constant 48 : index
    %c0_12 = arith.constant 0 : index
    %18 = vector.load %arg7[%c48, %c0_12] : memref<320x128xf32, #tpu.memory_space<vmem>>, vector<8x128xf32>
    tpu.vector_store %arg7[%c48, %c0_12], %17 {strides = array<i32>} : memref<320x128xf32, #tpu.memory_space<vmem>>, vector<8x128xf32>,
    %19 = vector.extract_strided_slice %4 {offsets = [0, 7], sizes = [8, 128], strides = [1, 1]} : vector<8x256xf32> to vector<8x128xf32>
    %c56 = arith.constant 56 : index
    %c0_13 = arith.constant 0 : index
    %20 = vector.load %arg7[%c56, %c0_13] : memref<320x128xf32, #tpu.memory_space<vmem>>, vector<8x128xf32>
    tpu.vector_store %arg7[%c56, %c0_13], %19 {strides = array<i32>} : memref<320x128xf32, #tpu.memory_space<vmem>>, vector<8x128xf32>,
    %21 = vector.extract_strided_slice %4 {offsets = [0, 8], sizes = [8, 128], strides = [1, 1]} : vector<8x256xf32> to vector<8x128xf32>
    %c64 = arith.constant 64 : index
    %c0_14 = arith.constant 0 : index
    %22 = vector.load %arg7[%c64, %c0_14] : memref<320x128xf32, #tpu.memory_space<vmem>>, vector<8x128xf32>
    tpu.vector_store %arg7[%c64, %c0_14], %21 {strides = array<i32>} : memref<320x128xf32, #tpu.memory_space<vmem>>, vector<8x128xf32>,
    %23 = vector.extract_strided_slice %4 {offsets = [0, 9], sizes = [8, 128], strides = [1, 1]} : vector<8x256xf32> to vector<8x128xf32>
    %c72 = arith.constant 72 : index
    %c0_15 = arith.constant 0 : index
    %24 = vector.load %arg7[%c72, %c0_15] : memref<320x128xf32, #tpu.memory_space<vmem>>, vector<8x128xf32>
    tpu.vector_store %arg7[%c72, %c0_15], %23 {strides = array<i32>} : memref<320x128xf32, #tpu.memory_space<vmem>>, vector<8x128xf32>,
    %25 = vector.extract_strided_slice %4 {offsets = [0, 10], sizes = [8, 128], strides = [1, 1]} : vector<8x256xf32> to vector<8x128xf32>
    %c80 = arith.constant 80 : index
    %c0_16 = arith.constant 0 : index
    %26 = vector.load %arg7[%c80, %c0_16] : memref<320x128xf32, #tpu.memory_space<vmem>>, vector<8x128xf32>
    tpu.vector_store %arg7[%c80, %c0_16], %25 {strides = array<i32>} : memref<320x128xf32, #tpu.memory_space<vmem>>, vector<8x128xf32>,
    %27 = vector.extract_strided_slice %4 {offsets = [0, 11], sizes = [8, 128], strides = [1, 1]} : vector<8x256xf32> to vector<8x128xf32>
    %c88 = arith.constant 88 : index
    %c0_17 = arith.constant 0 : index
    %28 = vector.load %arg7[%c88, %c0_17] : memref<320x128xf32, #tpu.memory_space<vmem>>, vector<8x128xf32>
    tpu.vector_store %arg7[%c88, %c0_17], %27 {strides = array<i32>} : memref<320x128xf32, #tpu.memory_space<vmem>>, vector<8x128xf32>,
    %29 = vector.extract_strided_slice %4 {offsets = [0, 12], sizes = [8, 128], strides = [1, 1]} : vector<8x256xf32> to vector<8x128xf32>
    %c96 = arith.constant 96 : index
    %c0_18 = arith.constant 0 : index
    %30 = vector.load %arg7[%c96, %c0_18] : memref<320x128xf32, #tpu.memory_space<vmem>>, vector<8x128xf32>
    tpu.vector_store %arg7[%c96, %c0_18], %29 {strides = array<i32>} : memref<320x128xf32, #tpu.memory_space<vmem>>, vector<8x128xf32>,
    %31 = vector.extract_strided_slice %4 {offsets = [0, 13], sizes = [8, 128], strides = [1, 1]} : vector<8x256xf32> to vector<8x128xf32>
    %c104 = arith.constant 104 : index
    %c0_19 = arith.constant 0 : index
    %32 = vector.load %arg7[%c104, %c0_19] : memref<320x128xf32, #tpu.memory_space<vmem>>, vector<8x128xf32>
    tpu.vector_store %arg7[%c104, %c0_19], %31 {strides = array<i32>} : memref<320x128xf32, #tpu.memory_space<vmem>>, vector<8x128xf32>,
    %33 = vector.extract_strided_slice %4 {offsets = [0, 14], sizes = [8, 128], strides = [1, 1]} : vector<8x256xf32> to vector<8x128xf32>
    %c112 = arith.constant 112 : index
    %c0_20 = arith.constant 0 : index
    %34 = vector.load %arg7[%c112, %c0_20] : memref<320x128xf32, #tpu.memory_space<vmem>>, vector<8x128xf32>
    tpu.vector_store %arg7[%c112, %c0_20], %33 {strides = array<i32>} : memref<320x128xf32, #tpu.memory_space<vmem>>, vector<8x128xf32>,
    %35 = vector.extract_strided_slice %4 {offsets = [0, 15], sizes = [8, 128], strides = [1, 1]} : vector<8x256xf32> to vector<8x128xf32>
    %c120 = arith.constant 120 : index
    %c0_21 = arith.constant 0 : index
    %36 = vector.load %arg7[%c120, %c0_21] : memref<320x128xf32, #tpu.memory_space<vmem>>, vector<8x128xf32>
    tpu.vector_store %arg7[%c120, %c0_21], %35 {strides = array<i32>} : memref<320x128xf32, #tpu.memory_space<vmem>>, vector<8x128xf32>,
    %37 = vector.extract_strided_slice %4 {offsets = [0, 16], sizes = [8, 128], strides = [1, 1]} : vector<8x256xf32> to vector<8x128xf32>
    %c128 = arith.constant 128 : index
    %c0_22 = arith.constant 0 : index
    %38 = vector.load %arg7[%c128, %c0_22] : memref<320x128xf32, #tpu.memory_space<vmem>>, vector<8x128xf32>
    tpu.vector_store %arg7[%c128, %c0_22], %37 {strides = array<i32>} : memref<320x128xf32, #tpu.memory_space<vmem>>, vector<8x128xf32>,
    %39 = vector.extract_strided_slice %4 {offsets = [0, 17], sizes = [8, 128], strides = [1, 1]} : vector<8x256xf32> to vector<8x128xf32>
    %c136 = arith.constant 136 : index
    %c0_23 = arith.constant 0 : index
    %40 = vector.load %arg7[%c136, %c0_23] : memref<320x128xf32, #tpu.memory_space<vmem>>, vector<8x128xf32>
    tpu.vector_store %arg7[%c136, %c0_23], %39 {strides = array<i32>} : memref<320x128xf32, #tpu.memory_space<vmem>>, vector<8x128xf32>,
    %41 = vector.extract_strided_slice %4 {offsets = [0, 18], sizes = [8, 128], strides = [1, 1]} : vector<8x256xf32> to vector<8x128xf32>
    %c144 = arith.constant 144 : index
    %c0_24 = arith.constant 0 : index
    %42 = vector.load %arg7[%c144, %c0_24] : memref<320x128xf32, #tpu.memory_space<vmem>>, vector<8x128xf32>
    tpu.vector_store %arg7[%c144, %c0_24], %41 {strides = array<i32>} : memref<320x128xf32, #tpu.memory_space<vmem>>, vector<8x128xf32>,
    %43 = vector.extract_strided_slice %4 {offsets = [0, 19], sizes = [8, 128], strides = [1, 1]} : vector<8x256xf32> to vector<8x128xf32>
    %c152 = arith.constant 152 : index
    %c0_25 = arith.constant 0 : index
    %44 = vector.load %arg7[%c152, %c0_25] : memref<320x128xf32, #tpu.memory_space<vmem>>, vector<8x128xf32>
    tpu.vector_store %arg7[%c152, %c0_25], %43 {strides = array<i32>} : memref<320x128xf32, #tpu.memory_space<vmem>>, vector<8x128xf32>,
    %45 = vector.extract_strided_slice %4 {offsets = [0, 20], sizes = [8, 128], strides = [1, 1]} : vector<8x256xf32> to vector<8x128xf32>
    %c160 = arith.constant 160 : index
    %c0_26 = arith.constant 0 : index
    %46 = vector.load %arg7[%c160, %c0_26] : memref<320x128xf32, #tpu.memory_space<vmem>>, vector<8x128xf32>
    tpu.vector_store %arg7[%c160, %c0_26], %45 {strides = array<i32>} : memref<320x128xf32, #tpu.memory_space<vmem>>, vector<8x128xf32>,
    %47 = vector.extract_strided_slice %4 {offsets = [0, 21], sizes = [8, 128], strides = [1, 1]} : vector<8x256xf32> to vector<8x128xf32>
    %c168 = arith.constant 168 : index
    %c0_27 = arith.constant 0 : index
    %48 = vector.load %arg7[%c168, %c0_27] : memref<320x128xf32, #tpu.memory_space<vmem>>, vector<8x128xf32>
    tpu.vector_store %arg7[%c168, %c0_27], %47 {strides = array<i32>} : memref<320x128xf32, #tpu.memory_space<vmem>>, vector<8x128xf32>,
    %49 = vector.extract_strided_slice %4 {offsets = [0, 22], sizes = [8, 128], strides = [1, 1]} : vector<8x256xf32> to vector<8x128xf32>
    %c176 = arith.constant 176 : index
    %c0_28 = arith.constant 0 : index
    %50 = vector.load %arg7[%c176, %c0_28] : memref<320x128xf32, #tpu.memory_space<vmem>>, vector<8x128xf32>
    tpu.vector_store %arg7[%c176, %c0_28], %49 {strides = array<i32>} : memref<320x128xf32, #tpu.memory_space<vmem>>, vector<8x128xf32>,
    %51 = vector.extract_strided_slice %4 {offsets = [0, 23], sizes = [8, 128], strides = [1, 1]} : vector<8x256xf32> to vector<8x128xf32>
    %c184 = arith.constant 184 : index
    %c0_29 = arith.constant 0 : index
    %52 = vector.load %arg7[%c184, %c0_29] : memref<320x128xf32, #tpu.memory_space<vmem>>, vector<8x128xf32>
    tpu.vector_store %arg7[%c184, %c0_29], %51 {strides = array<i32>} : memref<320x128xf32, #tpu.memory_space<vmem>>, vector<8x128xf32>,
    %53 = vector.extract_strided_slice %4 {offsets = [0, 24], sizes = [8, 128], strides = [1, 1]} : vector<8x256xf32> to vector<8x128xf32>
    %c192 = arith.constant 192 : index
    %c0_30 = arith.constant 0 : index
    %54 = vector.load %arg7[%c192, %c0_30] : memref<320x128xf32, #tpu.memory_space<vmem>>, vector<8x128xf32>
    tpu.vector_store %arg7[%c192, %c0_30], %53 {strides = array<i32>} : memref<320x128xf32, #tpu.memory_space<vmem>>, vector<8x128xf32>,
    %55 = vector.extract_strided_slice %4 {offsets = [0, 25], sizes = [8, 128], strides = [1, 1]} : vector<8x256xf32> to vector<8x128xf32>
    %c200 = arith.constant 200 : index
    %c0_31 = arith.constant 0 : index
    %56 = vector.load %arg7[%c200, %c0_31] : memref<320x128xf32, #tpu.memory_space<vmem>>, vector<8x128xf32>
    tpu.vector_store %arg7[%c200, %c0_31], %55 {strides = array<i32>} : memref<320x128xf32, #tpu.memory_space<vmem>>, vector<8x128xf32>,
    %57 = vector.extract_strided_slice %4 {offsets = [0, 26], sizes = [8, 128], strides = [1, 1]} : vector<8x256xf32> to vector<8x128xf32>
    %c208 = arith.constant 208 : index
    %c0_32 = arith.constant 0 : index
    %58 = vector.load %arg7[%c208, %c0_32] : memref<320x128xf32, #tpu.memory_space<vmem>>, vector<8x128xf32>
    tpu.vector_store %arg7[%c208, %c0_32], %57 {strides = array<i32>} : memref<320x128xf32, #tpu.memory_space<vmem>>, vector<8x128xf32>,
    %59 = vector.extract_strided_slice %4 {offsets = [0, 27], sizes = [8, 128], strides = [1, 1]} : vector<8x256xf32> to vector<8x128xf32>
    %c216 = arith.constant 216 : index
    %c0_33 = arith.constant 0 : index
    %60 = vector.load %arg7[%c216, %c0_33] : memref<320x128xf32, #tpu.memory_space<vmem>>, vector<8x128xf32>
    tpu.vector_store %arg7[%c216, %c0_33], %59 {strides = array<i32>} : memref<320x128xf32, #tpu.memory_space<vmem>>, vector<8x128xf32>,
    %61 = vector.extract_strided_slice %4 {offsets = [0, 28], sizes = [8, 128], strides = [1, 1]} : vector<8x256xf32> to vector<8x128xf32>
    %c224 = arith.constant 224 : index
    %c0_34 = arith.constant 0 : index
    %62 = vector.load %arg7[%c224, %c0_34] : memref<320x128xf32, #tpu.memory_space<vmem>>, vector<8x128xf32>
    tpu.vector_store %arg7[%c224, %c0_34], %61 {strides = array<i32>} : memref<320x128xf32, #tpu.memory_space<vmem>>, vector<8x128xf32>,
    %63 = vector.extract_strided_slice %4 {offsets = [0, 29], sizes = [8, 128], strides = [1, 1]} : vector<8x256xf32> to vector<8x128xf32>
    %c232 = arith.constant 232 : index
    %c0_35 = arith.constant 0 : index
    %64 = vector.load %arg7[%c232, %c0_35] : memref<320x128xf32, #tpu.memory_space<vmem>>, vector<8x128xf32>
    tpu.vector_store %arg7[%c232, %c0_35], %63 {strides = array<i32>} : memref<320x128xf32, #tpu.memory_space<vmem>>, vector<8x128xf32>,
    %65 = vector.extract_strided_slice %4 {offsets = [0, 30], sizes = [8, 128], strides = [1, 1]} : vector<8x256xf32> to vector<8x128xf32>
    %c240 = arith.constant 240 : index
    %c0_36 = arith.constant 0 : index
    %66 = vector.load %arg7[%c240, %c0_36] : memref<320x128xf32, #tpu.memory_space<vmem>>, vector<8x128xf32>
    tpu.vector_store %arg7[%c240, %c0_36], %65 {strides = array<i32>} : memref<320x128xf32, #tpu.memory_space<vmem>>, vector<8x128xf32>,
    %67 = vector.extract_strided_slice %4 {offsets = [0, 31], sizes = [8, 128], strides = [1, 1]} : vector<8x256xf32> to vector<8x128xf32>
    %c248 = arith.constant 248 : index
    %c0_37 = arith.constant 0 : index
    %68 = vector.load %arg7[%c248, %c0_37] : memref<320x128xf32, #tpu.memory_space<vmem>>, vector<8x128xf32>
    tpu.vector_store %arg7[%c248, %c0_37], %67 {strides = array<i32>} : memref<320x128xf32, #tpu.memory_space<vmem>>, vector<8x128xf32>,
    %69 = vector.extract_strided_slice %4 {offsets = [0, 32], sizes = [8, 128], strides = [1, 1]} : vector<8x256xf32> to vector<8x128xf32>
    %c256 = arith.constant 256 : index
    %c0_38 = arith.constant 0 : index
    %70 = vector.load %arg7[%c256, %c0_38] : memref<320x128xf32, #tpu.memory_space<vmem>>, vector<8x128xf32>
    tpu.vector_store %arg7[%c256, %c0_38], %69 {strides = array<i32>} : memref<320x128xf32, #tpu.memory_space<vmem>>, vector<8x128xf32>,
    %71 = vector.extract_strided_slice %4 {offsets = [0, 33], sizes = [8, 128], strides = [1, 1]} : vector<8x256xf32> to vector<8x128xf32>
    %c264 = arith.constant 264 : index
    %c0_39 = arith.constant 0 : index
    %72 = vector.load %arg7[%c264, %c0_39] : memref<320x128xf32, #tpu.memory_space<vmem>>, vector<8x128xf32>
    tpu.vector_store %arg7[%c264, %c0_39], %71 {strides = array<i32>} : memref<320x128xf32, #tpu.memory_space<vmem>>, vector<8x128xf32>,
    %73 = vector.extract_strided_slice %4 {offsets = [0, 34], sizes = [8, 128], strides = [1, 1]} : vector<8x256xf32> to vector<8x128xf32>
    %c272 = arith.constant 272 : index
    %c0_40 = arith.constant 0 : index
    %74 = vector.load %arg7[%c272, %c0_40] : memref<320x128xf32, #tpu.memory_space<vmem>>, vector<8x128xf32>
    tpu.vector_store %arg7[%c272, %c0_40], %73 {strides = array<i32>} : memref<320x128xf32, #tpu.memory_space<vmem>>, vector<8x128xf32>,
    %75 = vector.extract_strided_slice %4 {offsets = [0, 35], sizes = [8, 128], strides = [1, 1]} : vector<8x256xf32> to vector<8x128xf32>
    %c280 = arith.constant 280 : index
    %c0_41 = arith.constant 0 : index
    %76 = vector.load %arg7[%c280, %c0_41] : memref<320x128xf32, #tpu.memory_space<vmem>>, vector<8x128xf32>
    tpu.vector_store %arg7[%c280, %c0_41], %75 {strides = array<i32>} : memref<320x128xf32, #tpu.memory_space<vmem>>, vector<8x128xf32>,
    %77 = vector.extract_strided_slice %4 {offsets = [0, 36], sizes = [8, 128], strides = [1, 1]} : vector<8x256xf32> to vector<8x128xf32>
    %c288 = arith.constant 288 : index
    %c0_42 = arith.constant 0 : index
    %78 = vector.load %arg7[%c288, %c0_42] : memref<320x128xf32, #tpu.memory_space<vmem>>, vector<8x128xf32>
    tpu.vector_store %arg7[%c288, %c0_42], %77 {strides = array<i32>} : memref<320x128xf32, #tpu.memory_space<vmem>>, vector<8x128xf32>,
    %79 = vector.extract_strided_slice %4 {offsets = [0, 37], sizes = [8, 128], strides = [1, 1]} : vector<8x256xf32> to vector<8x128xf32>
    %c296 = arith.constant 296 : index
    %c0_43 = arith.constant 0 : index
    %80 = vector.load %arg7[%c296, %c0_43] : memref<320x128xf32, #tpu.memory_space<vmem>>, vector<8x128xf32>
    tpu.vector_store %arg7[%c296, %c0_43], %79 {strides = array<i32>} : memref<320x128xf32, #tpu.memory_space<vmem>>, vector<8x128xf32>,
    %81 = vector.extract_strided_slice %4 {offsets = [0, 38], sizes = [8, 128], strides = [1, 1]} : vector<8x256xf32> to vector<8x128xf32>
    %c304 = arith.constant 304 : index
    %c0_44 = arith.constant 0 : index
    %82 = vector.load %arg7[%c304, %c0_44] : memref<320x128xf32, #tpu.memory_space<vmem>>, vector<8x128xf32>
    tpu.vector_store %arg7[%c304, %c0_44], %81 {strides = array<i32>} : memref<320x128xf32, #tpu.memory_space<vmem>>, vector<8x128xf32>,
    %83 = vector.extract_strided_slice %4 {offsets = [0, 39], sizes = [8, 128], strides = [1, 1]} : vector<8x256xf32> to vector<8x128xf32>
    %c312 = arith.constant 312 : index
    %c0_45 = arith.constant 0 : index
    %84 = vector.load %arg7[%c312, %c0_45] : memref<320x128xf32, #tpu.memory_space<vmem>>, vector<8x128xf32>
    tpu.vector_store %arg7[%c312, %c0_45], %83 {strides = array<i32>} : memref<320x128xf32, #tpu.memory_space<vmem>>, vector<8x128xf32>,
    %c0_46 = arith.constant 0 : index
    %c0_47 = arith.constant 0 : index
    %85 = vector.load %arg4[%c0_46, %c0_47] : memref<16x320xf32, #tpu.memory_space<vmem>>, vector<16x320xf32>
    %c0_48 = arith.constant 0 : index
    %c0_49 = arith.constant 0 : index
    %86 = vector.load %arg7[%c0_48, %c0_49] : memref<320x128xf32, #tpu.memory_space<vmem>>, vector<320x128xf32>
    %cst = arith.constant dense<0.000000e+00> : vector<16x128xf32>
    %87 = tpu.matmul %85, %86, %cst {dimension_numbers = #tpu.dot_dimension_numbers<[1], [0], [0], [1], [0, 0, 1, 1], [], []>} : vector<16x320xf32>, vector<320x128xf32>, vector<16x128xf32> -> vector<16x128xf32>
    %c0_50 = arith.constant 0 : index
    %c0_51 = arith.constant 0 : index
    %c0_52 = arith.constant 0 : index
    %88 = vector.load %arg5[%c0_50, %c0_51, %c0_52] : memref<1x16x128xf32, #tpu.memory_space<vmem>>, vector<1x16x128xf32>
    %89 = vector.shape_cast %88 : vector<1x16x128xf32> to vector<16x128xf32>
    %90 = vector.shape_cast %87 : vector<16x128xf32> to vector<1x16x128xf32>
    tpu.vector_store %arg5[%c0_50, %c0_51, %c0_52], %90 {strides = array<i32>} : memref<1x16x128xf32, #tpu.memory_space<vmem>>, vector<1x16x128xf32>,
    %91 = tpu.iota {dimensions = array<i32: 1>} : vector<1x128xi32>
    %c128_i32 = arith.constant 128 : i32
    %92 = arith.muli %arg1, %c128_i32 : i32
    %93 = vector.broadcast %92 : i32 to vector<1x128xi32>
    %94 = arith.addi %91, %93 : vector<1x128xi32>
    %c64_i32 = arith.constant 64 : i32
    %95 = vector.broadcast %c64_i32 : i32 to vector<1x128xi32>
    %96 = arith.cmpi slt, %94, %95 : vector<1x128xi32>
    %cst_53 = arith.constant 0.000000e+00 : f32
    %97 = vector.shape_cast %96 : vector<1x128xi1> to vector<1x128xi1>
    %98 = vector.broadcast %97 : vector<1x128xi1> to vector<16x128xi1>
    %99 = vector.broadcast %cst_53 : f32 to vector<16x128xf32>
    %100 = arith.select %98, %87, %99 : vector<16x128xi1>, vector<16x128xf32>
    %cst_54 = arith.constant dense<0.000000e+00> : vector<16xf32>
    %101 = vector.multi_reduction <add>, %100, %cst_54 [1] : vector<16x128xf32> to vector<16xf32>
    %102 = vector.shape_cast %101 : vector<16xf32> to vector<16x1xf32>
    %103 = arith.mulf %100, %100 : vector<16x128xf32>
    %cst_55 = arith.constant dense<0.000000e+00> : vector<16xf32>
    %104 = vector.multi_reduction <add>, %103, %cst_55 [1] : vector<16x128xf32> to vector<16xf32>
    %105 = vector.shape_cast %104 : vector<16xf32> to vector<16x1xf32>
    %106 = tpu.concatenate %102, %105 in 1 : vector<16x1xf32>, vector<16x1xf32> -> vector<16x2xf32>
    %c0_56 = arith.constant 0 : index
    %c0_57 = arith.constant 0 : index
    %c0_58 = arith.constant 0 : index
    %c0_59 = arith.constant 0 : index
    %107 = vector.load %arg6[%c0_56, %c0_57, %c0_58, %c0_59] : memref<1x1x16x2xf32, #tpu.memory_space<vmem>>, vector<1x1x16x2xf32>
    %108 = vector.shape_cast %107 : vector<1x1x16x2xf32> to vector<16x2xf32>
    %109 = vector.shape_cast %106 : vector<16x2xf32> to vector<1x1x16x2xf32>
    tpu.vector_store %arg6[%c0_56, %c0_57, %c0_58, %c0_59], %109 {strides = array<i32>} : memref<1x1x16x2xf32, #tpu.memory_space<vmem>>, vector<1x1x16x2xf32>,
    return
  }
  func.func @transform_0(%arg0: i32, %arg1: i32) -> (i32, i32, i32) {
    %c0_i32 = arith.constant 0 : i32
    %c0_i32_0 = arith.constant 0 : i32
    return %arg0, %c0_i32, %arg1 : i32, i32, i32
  }
  func.func @transform_1(%arg0: i32, %arg1: i32) -> (i32, i32, i32) {
    %c1_i32 = arith.constant 1 : i32
    %0 = arith.addi %arg1, %c1_i32 : i32
    %c1_i32_0 = arith.constant 1 : i32
    %1 = arith.muli %0, %c1_i32_0 : i32
    %c0_i32 = arith.constant 0 : i32
    %c0_i32_1 = arith.constant 0 : i32
    return %arg0, %c0_i32, %1 : i32, i32, i32
  }
  func.func @transform_2(%arg0: i32, %arg1: i32) -> (i32, i32) {
    %c0_i32 = arith.constant 0 : i32
    %c0_i32_0 = arith.constant 0 : i32
    %c0_i32_1 = arith.constant 0 : i32
    return %c0_i32, %c0_i32_0 : i32, i32
  }
  func.func @transform_3(%arg0: i32, %arg1: i32) -> (i32, i32, i32) {
    %c0_i32 = arith.constant 0 : i32
    %c0_i32_0 = arith.constant 0 : i32
    return %arg0, %c0_i32, %arg1 : i32, i32, i32
  }
  func.func @transform_4(%arg0: i32, %arg1: i32) -> (i32, i32, i32, i32) {
    %c0_i32 = arith.constant 0 : i32
    %c0_i32_0 = arith.constant 0 : i32
    %c0_i32_1 = arith.constant 0 : i32
    return %arg0, %arg1, %c0_i32, %c0_i32_0 : i32, i32, i32, i32
  }
}

module attributes {stable_mosaic.version = 11 : i64} {
  func.func @_bn_act_kernel(%arg0: i32, %arg1: i32, %arg2: memref<1x16x128xf32, #tpu.memory_space<vmem>>, %arg3: memref<16x1xf32, #tpu.memory_space<vmem>>, %arg4: memref<16x1xf32, #tpu.memory_space<vmem>>, %arg5: memref<1x16x128xf32, #tpu.memory_space<vmem>>) attributes {dimension_semantics = [#tpu.dimension_semantics<parallel>, #tpu.dimension_semantics<parallel>], iteration_bounds = array<i64: 2, 1>, scalar_prefetch = 0 : i64, scratch_operands = 0 : i64, tpu.core_type = #tpu.core_type<tc>, window_params = [{transform_indices = @transform_0, window_bounds = array<i64: 1, 16, 128>}, {pipeline_mode = #tpu.pipeline_mode<synchronous>, transform_indices = @transform_1, window_bounds = array<i64: 16, 1>}, {pipeline_mode = #tpu.pipeline_mode<synchronous>, transform_indices = @transform_2, window_bounds = array<i64: 16, 1>}, {transform_indices = @transform_3, window_bounds = array<i64: 1, 16, 128>}]} {
    %c0 = arith.constant 0 : index
    %c0_0 = arith.constant 0 : index
    %c0_1 = arith.constant 0 : index
    %0 = vector.load %arg2[%c0, %c0_0, %c0_1] : memref<1x16x128xf32, #tpu.memory_space<vmem>>, vector<1x16x128xf32>
    %1 = vector.shape_cast %0 : vector<1x16x128xf32> to vector<16x128xf32>
    %c0_2 = arith.constant 0 : index
    %c0_3 = arith.constant 0 : index
    %2 = vector.load %arg3[%c0_2, %c0_3] : memref<16x1xf32, #tpu.memory_space<vmem>>, vector<16x1xf32>
    %3 = vector.broadcast %2 : vector<16x1xf32> to vector<16x128xf32>
    %4 = arith.mulf %1, %3 : vector<16x128xf32>
    %c0_4 = arith.constant 0 : index
    %c0_5 = arith.constant 0 : index
    %5 = vector.load %arg4[%c0_4, %c0_5] : memref<16x1xf32, #tpu.memory_space<vmem>>, vector<16x1xf32>
    %6 = vector.broadcast %5 : vector<16x1xf32> to vector<16x128xf32>
    %7 = arith.addf %4, %6 : vector<16x128xf32>
    %cst = arith.constant 0.000000e+00 : f32
    %8 = vector.broadcast %cst : f32 to vector<16x128xf32>
    %9 = arith.cmpf ogt, %7, %8 : vector<16x128xf32>
    %cst_6 = arith.constant 0.00999999977 : f32
    %10 = vector.broadcast %cst_6 : f32 to vector<16x128xf32>
    %11 = arith.mulf %10, %7 : vector<16x128xf32>
    %12 = arith.select %9, %7, %11 : vector<16x128xi1>, vector<16x128xf32>
    %c0_7 = arith.constant 0 : index
    %c0_8 = arith.constant 0 : index
    %c0_9 = arith.constant 0 : index
    %13 = vector.load %arg5[%c0_7, %c0_8, %c0_9] : memref<1x16x128xf32, #tpu.memory_space<vmem>>, vector<1x16x128xf32>
    %14 = vector.shape_cast %13 : vector<1x16x128xf32> to vector<16x128xf32>
    %15 = vector.shape_cast %12 : vector<16x128xf32> to vector<1x16x128xf32>
    tpu.vector_store %arg5[%c0_7, %c0_8, %c0_9], %15 {strides = array<i32>} : memref<1x16x128xf32, #tpu.memory_space<vmem>>, vector<1x16x128xf32>,
    return
  }
  func.func @transform_0(%arg0: i32, %arg1: i32) -> (i32, i32, i32) {
    %c0_i32 = arith.constant 0 : i32
    %c0_i32_0 = arith.constant 0 : i32
    return %arg0, %c0_i32, %arg1 : i32, i32, i32
  }
  func.func @transform_1(%arg0: i32, %arg1: i32) -> (i32, i32) {
    %c0_i32 = arith.constant 0 : i32
    %c0_i32_0 = arith.constant 0 : i32
    %c0_i32_1 = arith.constant 0 : i32
    return %c0_i32, %c0_i32_0 : i32, i32
  }
  func.func @transform_2(%arg0: i32, %arg1: i32) -> (i32, i32) {
    %c0_i32 = arith.constant 0 : i32
    %c0_i32_0 = arith.constant 0 : i32
    %c0_i32_1 = arith.constant 0 : i32
    return %c0_i32, %c0_i32_0 : i32, i32
  }
  func.func @transform_3(%arg0: i32, %arg1: i32) -> (i32, i32, i32) {
    %c0_i32 = arith.constant 0 : i32
    %c0_i32_0 = arith.constant 0 : i32
    return %arg0, %c0_i32, %arg1 : i32, i32, i32
  }
}

</mosaic_0001>

<bundles_post_ra>
// kernel: parallel_convolutions.3
= control target key start
LH: loop header
LB: loop body
LE: loop exit
PB: predicated region body
PF: predicated region fallthrough
CT: control target
= control target key end

     0   :  { %s408_s12 = smov 0   ;;  %s410_s13 = smov 0   ;;  %s453_s0 = inlined_call_operand.vmem [shape: f32[2,16,128], index: 0, kind: input, shape index: {}, may-alias: {0,3}]   ;;  %s454_s1 = inlined_call_operand.vmem [shape: f32[16,1], index: 1, kind: input, shape index: {}]   ;;  %s455_s2 = inlined_call_operand.vmem [shape: f32[16,1], index: 2, kind: input, shape index: {}]   ;;  %s456_s3 = inlined_call_operand.vmem [shape: f32[2,16,128], index: 3, kind: output, shape index: {}, may-alias: {0,3}]  }
   0x1   :  { %s412_s14 = smov 0  }
   0x2 LB: > { %s25_s15 = sadd.s32 1, %s381_s13  ;;  %p327_p0 = scmp.ge.s32.totalorder %s385_s14, 1  ;;  %s385_s14 = sphi %s412_s14, %s13_s14   ;;  %s381_s13 = sphi %s410_s13, %s458_s13   ;;  %s377_s12 = sphi %s408_s12, %s457_s12  }
   0x3   : > { %p27_p1 = scmp.ge.s32.totalorder %s25_s15, 2  ;;  %p156_p2 = scmp.lt.s32.totalorder %s385_s14, 3 }
   0x5   : > { %s460_s15 = smov (%p27_p1, %s25_s15), 0  ;;  %p157_p3 = pnand %p327_p0, %p156_p2 }
   0x6   : > { %v218_v0 = vld [vmem:[%s455_s2] sm:$0xff] (!%p157_p3)  ;;  %v387_v2 = vmov (!%p157_p3), 0   ;;  %v219_v3 = vld [vmem:[%s455_s2 + $0x8] sm:$0xff] (!%p157_p3)  ;;  %p186_p4 = scmp.lt.s32.totalorder (!%p157_p3), %s377_s12, 1 }
   0x7   : > { %160 = sbr.rel (%p157_p3) target bundleno = 148 (0x94), region = 32  ;;  %v204_v1 = vld [vmem:[%s454_s1] sm:$0xff] (!%p157_p3)  ;;  %362 = vset.pattern.permute.xlu1 (!%p157_p3), %v387_v2  ;;  %361 = vset.pattern.permute.xlu0 (!%p157_p3), %v387_v2  ;;  %v205_v4 = vld [vmem:[%s454_s1 + $0x8] sm:$0xff] (!%p157_p3) }
   0x8   : > { %222 = vperm.xlu1 (!%p157_p3), %362, %v218_v0   ;;  %208 = vperm.xlu0 (!%p157_p3), %361, %v204_v1  }
   0xc   : > { %227 = vperm.xlu1 (!%p157_p3), %362, %v219_v3   ;;  %213 = vperm.xlu0 (!%p157_p3), %361, %v205_v4  }
   0xe   : > { %s462_s12 = smov (!%p186_p4, %s377_s12), 1 }
   0xf   : > { %s334_s24 = sshll.u32 %s462_s12, 4 }
  0x10   : > { %s193_s27 = scalar_lea.vmem %s453_s0, %s334_s24  ;;  %s201_s30 = scalar_lea.vmem %s456_s3, %s334_s24 }
  0x11   : > { %v202_v5 = vld [vmem:[%s193_s27] sm:$0xff]  ;;  %v203_v9 = vld [vmem:[%s193_s27 + $0x8] sm:$0xff] }
  0x87   : > { %v223_v6 = vpop.permute.xlu1 %222  ;;  %v209_v7 = vpop.permute.xlu0 %208 }
  0x88   : > { %v216_v8 = vmul.f32 %v209_v7, %v202_v5 }
  0x8a   : > { %v230_v10 = vadd.f32 %v223_v6, %v216_v8 }
  0x8b   : > { %v214_v11 = vpop.permute.xlu0 %213  ;;  %v228_v14 = vpop.permute.xlu1 %227 }
  0x8c   : > { %vm232_vm0 = vcmp.gt.f32.partialorder %v230_v10, 0.0  ;;  %v234_v12 = vmul.f32 0.01, %v230_v10  ;;  %v217_v13 = vmul.f32 %v214_v11, %v203_v9 }
  0x8e   : > { %v236_v15 = vsel %vm232_vm0, %v230_v10, %v234_v12  ;;  %v231_v16 = vadd.f32 %v228_v14, %v217_v13 }
  0x8f   : > { %238 = vst [vmem:[%s201_s30] sm:$0xff] %v236_v15 }
  0x90   : > { %vm233_vm1 = vcmp.gt.f32.partialorder %v231_v16, 0.0  ;;  %v235_v17 = vmul.f32 0.01, %v231_v16 }
  0x92   : > { %v237_v18 = vsel %vm233_vm1, %v231_v16, %v235_v17 }
  0x93   : > { %239 = vst [vmem:[%s201_s30 + $0x8] sm:$0xff] %v237_v18 }
  0x94 PF: > { %s13_s14 = sadd.s32 1, %s385_s14   ;;  %s457_s12 = smov %s381_s13 }
  0x95   : > { %p10_p5 = scmp.ge.s32.totalorder %s13_s14, 4   ;;  %s458_s13 = smov %s460_s15 }
  0x97   :  { %12 = sbr.rel (!%p10_p5) target bundleno = 2 (0x2), region = 62 }

// kernel: parallel_convolutions.2
= control target key start
LH: loop header
LB: loop body
LE: loop exit
PB: predicated region body
PF: predicated region fallthrough
CT: control target
= control target key end

     0   :  { %s1476_s15 = smov 0   ;;  %s1478_s16 = smov 0   ;;  %s1586_s0 = inlined_call_operand.vmem [shape: f32[2,8,256], index: 0, kind: input, shape index: {}, may-alias: {0,1}]   ;;  %s1587_s1 = inlined_call_operand.vmem [shape: f32[2,8,256], index: 1, kind: input, shape index: {}, may-alias: {0,1}]   ;;  %s1588_s2 = inlined_call_operand.vmem [shape: f32[16,320], index: 2, kind: input, shape index: {}]   ;;  %s1589_s3 = inlined_call_operand.vmem [shape: f32[2,16,128], index: 3, kind: output, shape index: {0}]   ;;  %s1590_s4 = inlined_call_operand.vmem [shape: f32[2,1,16,2], index: 4, kind: output, shape index: {1}]  }
   0x1   :  { %s1480_s17 = smov 0  }
   0x2 LB: > { %s27_s18 = sadd.s32 1, %s1406_s16  ;;  %p996_p0 = scmp.ge.s32.totalorder %s1410_s17, 1  ;;  %s1410_s17 = sphi %s1480_s17, %s15_s17   ;;  %s1406_s16 = sphi %s1478_s16, %s1592_s16   ;;  %s1402_s15 = sphi %s1476_s15, %s1591_s15  }
   0x3   : > { %p29_p1 = scmp.ge.s32.totalorder %s27_s18, 2  ;;  %p205_p2 = scmp.lt.s32.totalorder %s1410_s17, 3 }
   0x5   : > { %s1594_s18 = smov (%p29_p1, %s27_s18), 0  ;;  %p206_p3 = pnand %p996_p0, %p205_p2 }
   0x6   : > { %p255_p4 = scmp.lt.s32.totalorder (!%p206_p3), %s1402_s15, 1  ;;  %s1412_s27 = smov (!%p206_p3), 112   ;;  %v608_v3 = vld [vmem:[%s1588_s2 + $0x8] sm:$0xff] (!%p206_p3)  ;;  %v609_v4 = vld [vmem:[%s1588_s2 + $0x10] sm:$0xff] (!%p206_p3)  ;;  %vm653_vm0 = vcmask (!%p206_p3), 523264   ;;  %vm299_vm1 = vcmask (!%p206_p3), 1039360  }
   0x7   : > { %209 = sbr.rel (%p206_p3) target bundleno = 585 (0x249), region = 32  ;;  %s1413_s28 = smov (!%p206_p3), 127   ;;  %724 = vmatprep.mubr.f32.mxu0 (!%p206_p3), %v608_v3  ;;  %1079 = vmatprep.mubr.msk.f32.mxu1 (!%p206_p3), %vm653_vm0, %v609_v4  ;;  %vm419_vm2 = vcmask (!%p206_p3), 916480   ;;  %vm427_vm3 = vcmask (!%p206_p3), 908288   ;;  %vm435_vm4 = vcmask (!%p206_p3), 900096   ;;  %vm443_vm5 = vcmask (!%p206_p3), 891904  }
   0x8   : > { %s1414_s29 = smov (!%p206_p3), 111   ;;  %s1415_s30 = smov (!%p206_p3), 110   ;;  %vm307_vm6 = vcmask (!%p206_p3), 1031168   ;;  %vm315_vm7 = vcmask (!%p206_p3), 1022976   ;;  %vm451_vm8 = vcmask (!%p206_p3), 883712   ;;  %vm459_vm9 = vcmask (!%p206_p3), 875520  }
   0x9   : > { %s1416_s5 = smov (!%p206_p3), 109   ;;  %s1417_s6 = smov (!%p206_p3), 126   ;;  %vm323_vm10 = vcmask (!%p206_p3), 1014784   ;;  %vm331_vm11 = vcmask (!%p206_p3), 1006592   ;;  %vm467_vm12 = vcmask (!%p206_p3), 867328   ;;  %vm475_vm13 = vcmask (!%p206_p3), 859136  }
   0xa   : > { %s1418_s7 = smov (!%p206_p3), 125   ;;  %s1419_s8 = smov (!%p206_p3), 108   ;;  %vm339_vm14 = vcmask (!%p206_p3), 998400   ;;  %vm347_vm15 = vcmask (!%p206_p3), 990208  }
   0xb   : > { %s1420_s9 = smov (!%p206_p3), 107   ;;  %s1421_s10 = smov (!%p206_p3), 124  }
   0xc   : > { %s1422_s11 = smov (!%p206_p3), 123   ;;  %s1423_s12 = smov (!%p206_p3), 106  }
   0xd   : > { %s1424_s13 = smov (!%p206_p3), 105   ;;  %s1425_s14 = smov (!%p206_p3), 122  }
   0xe   : > { %s1596_s15 = smov (!%p255_p4, %s1402_s15), 1  ;;  %s1427_s20 = smov 104  }
   0xf   : > { %s1494_s19 = sshll.u32 %s1596_s15, 4  ;;  %s1426_s15 = smov 121  }
  0x10   : > { %s262_s22 = scalar_lea.vmem %s1586_s0, %s1494_s19  ;;  %s1011_s23 = sadd.s32 8, %s1494_s19 }
  0x11   : > { %s271_s26 = scalar_lea.vmem %s1587_s1, %s1011_s23  ;;  %v1504_v0 = vld [vmem:[%s262_s22] sm:$0xff]  ;;  %s1428_s21 = smov 103  }
  0x12   : > { %v291_v1 = vld [vmem:[%s271_s26] sm:$0xff]  ;;  %s1429_s22 = smov 120   ;;  %s1430_s23 = smov 119  }
  0x13   : > { %v1507_v2 = vpack.i.bf16 %v291_v1, %v1504_v0  ;;  %s1431_s24 = smov 102   ;;  %s1432_s25 = smov 101  }
  0x14   : > { %s1433_s26 = smov 118  }
  0x15   : > { %1194 = vrot.lane.b32.xlu0 %v1507_v2, %s1412_s27  ;;  %1204 = vrot.lane.b32.xlu1 %v1507_v2, %s1413_s28  ;;  %s1434_s27 = smov 117   ;;  %s1435_s28 = smov 96  }
  0x19   : > { %1199 = vrot.lane.b32.xlu0 %v1507_v2, %s1414_s29  ;;  %1209 = vrot.lane.b32.xlu1 %v1507_v2, %s1415_s30  ;;  %s1436_s29 = smov 95   ;;  %s1437_s30 = smov 100  }
  0x1d   : > { %1214 = vrot.lane.b32.xlu0 %v1507_v2, %s1416_s5  ;;  %1219 = vrot.lane.b32.xlu1 %v1507_v2, %s1417_s6  ;;  %s1438_s5 = smov 99   ;;  %s1439_s6 = smov 116  }
  0x21   : > { %1224 = vrot.lane.b32.xlu0 %v1507_v2, %s1418_s7  ;;  %1229 = vrot.lane.b32.xlu1 %v1507_v2, %s1419_s8  ;;  %s1440_s7 = smov 115   ;;  %s1441_s8 = smov 94  }
  0x25   : > { %1234 = vrot.lane.b32.xlu0 %v1507_v2, %s1420_s9  ;;  %1239 = vrot.lane.b32.xlu1 %v1507_v2, %s1421_s10  ;;  %s1442_s9 = smov 93   ;;  %s1443_s10 = smov 98  }
  0x29   : > { %1244 = vrot.lane.b32.xlu0 %v1507_v2, %s1422_s11  ;;  %1249 = vrot.lane.b32.xlu1 %v1507_v2, %s1423_s12 }
  0x2d   : > { %1254 = vrot.lane.b32.xlu0 %v1507_v2, %s1424_s13  ;;  %1259 = vrot.lane.b32.xlu1 %v1507_v2, %s1425_s14  ;;  %s1444_s13 = smov 97   ;;  %s1445_s14 = smov 114  }
  0x31   : > { %1264 = vrot.lane.b32.xlu0 %v1507_v2, %s1426_s15  ;;  %1269 = vrot.lane.b32.xlu1 %v1507_v2, %s1427_s20  ;;  %s1446_s15 = smov 113   ;;  %s1447_s20 = smov 92  }
  0x35   : > { %1274 = vrot.lane.b32.xlu0 %v1507_v2, %s1428_s21  ;;  %1279 = vrot.lane.b32.xlu1 %v1507_v2, %s1429_s22 }
  0x39   : > { %1284 = vrot.lane.b32.xlu0 %v1507_v2, %s1430_s23  ;;  %1289 = vrot.lane.b32.xlu1 %v1507_v2, %s1431_s24  ;;  %s1448_s23 = smov 91   ;;  %s1449_s24 = smov 90  }
  0x3d   : > { %1294 = vrot.lane.b32.xlu0 %v1507_v2, %s1432_s25  ;;  %1299 = vrot.lane.b32.xlu1 %v1507_v2, %s1433_s26  ;;  %s1450_s25 = smov 89  }
  0x41   : > { %1304 = vrot.lane.b32.xlu0 %v1507_v2, %s1434_s27  ;;  %1309 = vrot.lane.b32.xlu1 %v1507_v2, %s1435_s28 }
  0x45   : > { %1314 = vrot.lane.b32.xlu0 %v1507_v2, %s1436_s29  ;;  %1319 = vrot.lane.b32.xlu1 %v1507_v2, %s1437_s30 }
  0x49   : > { %1324 = vrot.lane.b32.xlu0 %v1507_v2, %s1438_s5  ;;  %1329 = vrot.lane.b32.xlu1 %v1507_v2, %s1439_s6 }
  0x4d   : > { %1334 = vrot.lane.b32.xlu0 %v1507_v2, %s1440_s7  ;;  %1339 = vrot.lane.b32.xlu1 %v1507_v2, %s1441_s8 }
  0x51   : > { %1344 = vrot.lane.b32.xlu0 %v1507_v2, %s1442_s9  ;;  %1349 = vrot.lane.b32.xlu1 %v1507_v2, %s1443_s10  ;;  %s280_s10 = scalar_lea.vmem %s1589_s3, %s1494_s19 }
  0x55   : > { %1354 = vrot.lane.b32.xlu0 %v1507_v2, %s1444_s13  ;;  %1359 = vrot.lane.b32.xlu1 %v1507_v2, %s1445_s14  ;;  %s289_s13 = scalar_lea.vmem %s1590_s4, %s1494_s19 }
  0x59   : > { %1364 = vrot.lane.b32.xlu0 %v1507_v2, %s1446_s15  ;;  %1369 = vrot.lane.b32.xlu1 %v1507_v2, %s1447_s20 }
  0x5d   : > { %1374 = vrot.lane.b32.xlu0 %v1507_v2, %s1448_s23  ;;  %1379 = vrot.lane.b32.xlu1 %v1507_v2, %s1449_s24 }
  0x61   : > { %1384 = vrot.lane.b32.xlu0 %v1507_v2, %s1450_s25 }
  0x87   : > { %v1195_v5 = vpop.permute.xlu0 %1194  ;;  %v1205_v6 = vpop.permute.xlu1 %1204 }
  0x88   : > { %v1207_v7 = vunpack.i.h.bf16 %v1205_v6  ;;  %v1206_v8 = vunpack.i.l.bf16 %v1205_v6  ;;  %v1197_v9 = vunpack.i.h.bf16 %v1195_v5  ;;  %v1196_v10 = vunpack.i.l.bf16 %v1195_v5 }
  0x8a   : > { %v300_v13 = vsel %vm299_vm1, %v1206_v8, %v1207_v7  ;;  %v420_v18 = vsel %vm419_vm2, %v1196_v10, %v1197_v9  ;;  %vm483_vm1 = vcmask 850944   ;;  %vm491_vm2 = vcmask 842752  }
  0x8b   : > { %v1200_v11 = vpop.permute.xlu0 %1199  ;;  %v1210_v12 = vpop.permute.xlu1 %1209  ;;  %v1084_v20 = vpack.c.bf16 %v300_v13, %v1504_v0 }
  0x8c   : > { %v1202_v14 = vunpack.i.h.bf16 %v1200_v11  ;;  %v1201_v15 = vunpack.i.l.bf16 %v1200_v11  ;;  %v1212_v16 = vunpack.i.h.bf16 %v1210_v12  ;;  %v1211_v17 = vunpack.i.l.bf16 %v1210_v12 }
  0x8e   : > { %v428_v19 = vsel %vm427_vm3, %v1201_v15, %v1202_v14  ;;  %v436_v24 = vsel %vm435_vm4, %v1211_v17, %v1212_v16  ;;  %vm355_vm3 = vcmask 982016   ;;  %vm363_vm4 = vcmask 973824  }
  0x8f   : > { %v1215_v21 = vpop.permute.xlu0 %1214  ;;  %v1082_v22 = vpack.c.bf16 %v428_v19, %v420_v18  ;;  %v1220_v23 = vpop.permute.xlu1 %1219 }
  0x90   : > { %v1217_v25 = vunpack.i.h.bf16 %v1215_v21  ;;  %v1216_v26 = vunpack.i.l.bf16 %v1215_v21  ;;  %v1222_v27 = vunpack.i.h.bf16 %v1220_v23  ;;  %v1221_v28 = vunpack.i.l.bf16 %v1220_v23 }
  0x91   : > { %1083 = vmatprep.subr.bf16.mxu0 %v1082_v22 }
  0x92   : > { %1085 = vmatpush3.bf16.msra.mxu0 %v1084_v20  ;;  %v444_v29 = vsel %vm443_vm5, %v1216_v26, %v1217_v25  ;;  %v308_v33 = vsel %vm307_vm6, %v1221_v28, %v1222_v27  ;;  %vm499_vm5 = vcmask 834560   ;;  %vm507_vm6 = vcmask 826368  }
  0x93   : > { %v1225_v30 = vpop.permute.xlu0 %1224  ;;  %v1086_v31 = vpack.c.bf16 %v444_v29, %v436_v24  ;;  %v1230_v32 = vpop.permute.xlu1 %1229 }
  0x94   : > { %v1227_v34 = vunpack.i.h.bf16 %v1225_v30  ;;  %v1226_v35 = vunpack.i.l.bf16 %v1225_v30  ;;  %v1232_v36 = vunpack.i.h.bf16 %v1230_v32  ;;  %v1231_v37 = vunpack.i.l.bf16 %v1230_v32 }
  0x95   : > { %1087 = vmatprep.subr.bf16.mxu0 %v1086_v31 }
  0x96   : > { %v316_v38 = vsel %vm315_vm7, %v1226_v35, %v1227_v34  ;;  %v452_v42 = vsel %vm451_vm8, %v1231_v37, %v1232_v36  ;;  %vm371_vm7 = vcmask 965632   ;;  %vm379_vm8 = vcmask 957440  }
  0x97   : > { %v1235_v39 = vpop.permute.xlu0 %1234  ;;  %v1088_v40 = vpack.c.bf16 %v316_v38, %v308_v33  ;;  %v1240_v41 = vpop.permute.xlu1 %1239 }
  0x98   : > { %v1237_v43 = vunpack.i.h.bf16 %v1235_v39  ;;  %v1236_v44 = vunpack.i.l.bf16 %v1235_v39  ;;  %v1242_v45 = vunpack.i.h.bf16 %v1240_v41  ;;  %v1241_v46 = vunpack.i.l.bf16 %v1240_v41 }
  0x99   : > { %1089 = vmatpush3.bf16.msra.mxu0 %v1088_v40 }
  0x9a   : > { %v460_v47 = vsel %vm459_vm9, %v1236_v44, %v1237_v43  ;;  %v324_v51 = vsel %vm323_vm10, %v1241_v46, %v1242_v45  ;;  %vm547_vm9 = vcmask 785408   ;;  %vm555_vm10 = vcmask 777216  }
  0x9b   : > { %v1245_v48 = vpop.permute.xlu0 %1244  ;;  %v1090_v49 = vpack.c.bf16 %v460_v47, %v452_v42  ;;  %v1250_v50 = vpop.permute.xlu1 %1249 }
  0x9c   : > { %v1247_v52 = vunpack.i.h.bf16 %v1245_v48  ;;  %v1246_v53 = vunpack.i.l.bf16 %v1245_v48  ;;  %v1252_v54 = vunpack.i.h.bf16 %v1250_v50  ;;  %v1251_v55 = vunpack.i.l.bf16 %v1250_v50 }
  0x9d   : > { %1091 = vmatprep.subr.bf16.mxu0 %v1090_v49 }
  0x9e   : > { %v332_v56 = vsel %vm331_vm11, %v1246_v53, %v1247_v52  ;;  %v468_v60 = vsel %vm467_vm12, %v1251_v55, %v1252_v54  ;;  %vm515_vm11 = vcmask 818176   ;;  %vm523_vm12 = vcmask 809984  }
  0x9f   : > { %v1255_v57 = vpop.permute.xlu0 %1254  ;;  %v1092_v58 = vpack.c.bf16 %v332_v56, %v324_v51  ;;  %v1260_v59 = vpop.permute.xlu1 %1259 }
  0xa0   : > { %v1257_v61 = vunpack.i.h.bf16 %v1255_v57  ;;  %v1256_v62 = vunpack.i.l.bf16 %v1255_v57  ;;  %v1262_v63 = vunpack.i.h.bf16 %v1260_v59  ;;  %v1261_v0 = vunpack.i.l.bf16 %v1260_v59 }
  0xa1   : > { %1093 = vmatpush3.bf16.msra.mxu0 %v1092_v58 }
  0xa2   : > { %v476_v1 = vsel %vm475_vm13, %v1256_v62, %v1257_v61  ;;  %v340_v5 = vsel %vm339_vm14, %v1261_v0, %v1262_v63  ;;  %vm387_vm13 = vcmask 949248   ;;  %vm395_vm14 = vcmask 941056  }
  0xa3   : > { %v1265_v2 = vpop.permute.xlu0 %1264  ;;  %v1094_v3 = vpack.c.bf16 %v476_v1, %v468_v60  ;;  %v1270_v4 = vpop.permute.xlu1 %1269 }
  0xa4   : > { %v1267_v6 = vunpack.i.h.bf16 %v1265_v2  ;;  %v1266_v7 = vunpack.i.l.bf16 %v1265_v2  ;;  %v1272_v8 = vunpack.i.h.bf16 %v1270_v4  ;;  %v1271_v9 = vunpack.i.l.bf16 %v1270_v4 }
  0xa5   : > { %1095 = vmatprep.subr.bf16.mxu0 %v1094_v3 }
  0xa6   : > { %v348_v10 = vsel %vm347_vm15, %v1266_v7, %v1267_v6  ;;  %v484_v14 = vsel %vm483_vm1, %v1271_v9, %v1272_v8  ;;  %vm563_vm15 = vcmask 769024   ;;  %vm571_vm1 = vcmask 760832  }
  0xa7   : > { %v1275_v11 = vpop.permute.xlu0 %1274  ;;  %v1096_v12 = vpack.c.bf16 %v348_v10, %v340_v5  ;;  %v1280_v13 = vpop.permute.xlu1 %1279 }
  0xa8   : > { %v1277_v15 = vunpack.i.h.bf16 %v1275_v11  ;;  %v1276_v16 = vunpack.i.l.bf16 %v1275_v11  ;;  %v1282_v17 = vunpack.i.h.bf16 %v1280_v13  ;;  %v1281_v18 = vunpack.i.l.bf16 %v1280_v13 }
  0xa9   : > { %1097 = vmatpush3.bf16.msra.mxu0 %v1096_v12 }
  0xaa   : > { %v492_v19 = vsel %vm491_vm2, %v1276_v16, %v1277_v15  ;;  %v356_v23 = vsel %vm355_vm3, %v1281_v18, %v1282_v17  ;;  %vm531_vm2 = vcmask 801792   ;;  %vm539_vm3 = vcmask 793600  }
  0xab   : > { %v1285_v20 = vpop.permute.xlu0 %1284  ;;  %v1098_v21 = vpack.c.bf16 %v492_v19, %v484_v14  ;;  %v1290_v22 = vpop.permute.xlu1 %1289 }
  0xac   : > { %v1287_v24 = vunpack.i.h.bf16 %v1285_v20  ;;  %v1286_v25 = vunpack.i.l.bf16 %v1285_v20  ;;  %v1292_v26 = vunpack.i.h.bf16 %v1290_v22  ;;  %v1291_v27 = vunpack.i.l.bf16 %v1290_v22 }
  0xad   : > { %1099 = vmatprep.subr.bf16.mxu0 %v1098_v21 }
  0xae   : > { %v364_v28 = vsel %vm363_vm4, %v1286_v25, %v1287_v24  ;;  %v500_v32 = vsel %vm499_vm5, %v1291_v27, %v1292_v26  ;;  %vm403_vm4 = vcmask 932864   ;;  %vm411_vm5 = vcmask 924672  }
  0xaf   : > { %v1295_v29 = vpop.permute.xlu0 %1294  ;;  %v1100_v30 = vpack.c.bf16 %v364_v28, %v356_v23  ;;  %v1300_v31 = vpop.permute.xlu1 %1299 }
  0xb0   : > { %v1297_v33 = vunpack.i.h.bf16 %v1295_v29  ;;  %v1296_v34 = vunpack.i.l.bf16 %v1295_v29  ;;  %v1302_v35 = vunpack.i.h.bf16 %v1300_v31  ;;  %v1301_v36 = vunpack.i.l.bf16 %v1300_v31 }
  0xb1   : > { %1101 = vmatpush3.bf16.msra.mxu0 %v1100_v30 }
  0xb2   : > { %v508_v37 = vsel %vm507_vm6, %v1296_v34, %v1297_v33  ;;  %v372_v41 = vsel %vm371_vm7, %v1301_v36, %v1302_v35  ;;  %vm579_vm6 = vcmask 752640   ;;  %vm587_vm7 = vcmask 744448  }
  0xb3   : > { %v1305_v38 = vpop.permute.xlu0 %1304  ;;  %v1102_v39 = vpack.c.bf16 %v508_v37, %v500_v32  ;;  %v1310_v40 = vpop.permute.xlu1 %1309 }
  0xb4   : > { %v1307_v42 = vunpack.i.h.bf16 %v1305_v38  ;;  %v1306_v43 = vunpack.i.l.bf16 %v1305_v38  ;;  %v1312_v44 = vunpack.i.h.bf16 %v1310_v40  ;;  %v1311_v45 = vunpack.i.l.bf16 %v1310_v40 }
  0xb5   : > { %1103 = vmatprep.subr.bf16.mxu0 %v1102_v39 }
  0xb6   : > { %v380_v46 = vsel %vm379_vm8, %v1306_v43, %v1307_v42  ;;  %v548_v50 = vsel %vm547_vm9, %v1311_v45, %v1312_v44  ;;  %v607_v45 = vld [vmem:[%s1588_s2] sm:$0xff]  ;;  %vm595_vm8 = vcmask 736256   ;;  %vm603_vm9 = vcmask 728064  }
  0xb7   : > { %v1315_v47 = vpop.permute.xlu0 %1314  ;;  %v1104_v48 = vpack.c.bf16 %v380_v46, %v372_v41  ;;  %v1320_v49 = vpop.permute.xlu1 %1319 }
  0xb8   : > { %v1317_v51 = vunpack.i.h.bf16 %v1315_v47  ;;  %v1316_v52 = vunpack.i.l.bf16 %v1315_v47  ;;  %v1322_v53 = vunpack.i.h.bf16 %v1320_v49  ;;  %v1321_v54 = vunpack.i.l.bf16 %v1320_v49  ;;  %v611_v47 = vld [vmem:[%s1588_s2 + $0x20] sm:$0xff] }
  0xb9   : > { %1105 = vmatpush3.bf16.msra.mxu0 %v1104_v48 }
  0xba   : > { %v556_v55 = vsel %vm555_vm10, %v1316_v52, %v1317_v51  ;;  %v516_v59 = vsel %vm515_vm11, %v1321_v54, %v1322_v53  ;;  %v610_v53 = vld [vmem:[%s1588_s2 + $0x18] sm:$0xff]  ;;  %vm835_vm11 = vcmask 15360  }
  0xbb   : > { %v1325_v56 = vpop.permute.xlu0 %1324  ;;  %v1114_v57 = vpack.c.bf16 %v556_v55, %v548_v50  ;;  %v1330_v58 = vpop.permute.xlu1 %1329 }
  0xbc   : > { %v1327_v60 = vunpack.i.h.bf16 %v1325_v56  ;;  %v1326_v61 = vunpack.i.l.bf16 %v1325_v56  ;;  %v1332_v62 = vunpack.i.h.bf16 %v1330_v58  ;;  %v1331_v63 = vunpack.i.l.bf16 %v1330_v58  ;;  %v612_v56 = vld [vmem:[%s1588_s2 + $0x28] sm:$0xff] }
  0xbd   : > { %1115 = vmatprep.subr.bf16.mxu1 %v1114_v57 }
  0xbe   : > { %1117 = vmatpush3.bf16.msra.mxu1 %v1114_v57  ;;  %v524_v0 = vsel %vm523_vm12, %v1326_v61, %v1327_v60  ;;  %v388_v4 = vsel %vm387_vm13, %v1331_v63, %v1332_v62 }
  0xbf   : > { %v1335_v1 = vpop.permute.xlu0 %1334  ;;  %v1106_v2 = vpack.c.bf16 %v524_v0, %v516_v59  ;;  %v1340_v3 = vpop.permute.xlu1 %1339  ;;  %v812_v59 = vlaneseq }
  0xc0   : > { %v1337_v5 = vunpack.i.h.bf16 %v1335_v1  ;;  %v1336_v6 = vunpack.i.l.bf16 %v1335_v1  ;;  %v1342_v7 = vunpack.i.h.bf16 %v1340_v3  ;;  %v1341_v8 = vunpack.i.l.bf16 %v1340_v3 }
  0xc1   : > { %1107 = vmatprep.subr.bf16.mxu0 %v1106_v2  ;;  %v813_v63 = vand.u32 127, %v812_v59 }
  0xc2   : > { %v396_v9 = vsel %vm395_vm14, %v1336_v6, %v1337_v5  ;;  %v564_v13 = vsel %vm563_vm15, %v1341_v8, %v1342_v7 }
  0xc3   : > { %v1345_v10 = vpop.permute.xlu0 %1344  ;;  %v1108_v11 = vpack.c.bf16 %v396_v9, %v388_v4  ;;  %v1350_v12 = vpop.permute.xlu1 %1349  ;;  %vm817_vm10 = vcmp.lt.s32.totalorder %v813_v63, 64 }
  0xc4   : > { %v1347_v14 = vunpack.i.h.bf16 %v1345_v10  ;;  %v1346_v15 = vunpack.i.l.bf16 %v1345_v10  ;;  %v1352_v16 = vunpack.i.h.bf16 %v1350_v12  ;;  %v1351_v17 = vunpack.i.l.bf16 %v1350_v12 }
  0xc5   : > { %1109 = vmatpush3.bf16.msra.mxu0 %v1108_v11 }
  0xc6   : > { %v572_v18 = vsel %vm571_vm1, %v1346_v15, %v1347_v14  ;;  %v532_v22 = vsel %vm531_vm2, %v1351_v17, %v1352_v16 }
  0xc7   : > { %v1355_v19 = vpop.permute.xlu0 %1354  ;;  %v1118_v20 = vpack.c.bf16 %v572_v18, %v564_v13  ;;  %v1360_v21 = vpop.permute.xlu1 %1359 }
  0xc8   : > { %v1357_v23 = vunpack.i.h.bf16 %v1355_v19  ;;  %v1356_v24 = vunpack.i.l.bf16 %v1355_v19  ;;  %v1362_v25 = vunpack.i.h.bf16 %v1360_v21  ;;  %v1361_v26 = vunpack.i.l.bf16 %v1360_v21 }
  0xc9   : > { %1119 = vmatprep.subr.bf16.mxu1 %v1118_v20 }
  0xca   : > { %1121 = vmatpush3.bf16.msra.mxu1 %v1118_v20  ;;  %v540_v27 = vsel %vm539_vm3, %v1356_v24, %v1357_v23  ;;  %v404_v31 = vsel %vm403_vm4, %v1361_v26, %v1362_v25 }
  0xcb   : > { %v1365_v28 = vpop.permute.xlu0 %1364  ;;  %v1110_v29 = vpack.c.bf16 %v540_v27, %v532_v22  ;;  %v1370_v30 = vpop.permute.xlu1 %1369 }
  0xcc   : > { %v1367_v32 = vunpack.i.h.bf16 %v1365_v28  ;;  %v1366_v33 = vunpack.i.l.bf16 %v1365_v28  ;;  %v1372_v34 = vunpack.i.h.bf16 %v1370_v30  ;;  %v1371_v35 = vunpack.i.l.bf16 %v1370_v30 }
  0xcd   : > { %1111 = vmatprep.subr.bf16.mxu0 %v1110_v29 }
  0xce   : > { %v412_v36 = vsel %vm411_vm5, %v1366_v33, %v1367_v32  ;;  %v580_v40 = vsel %vm579_vm6, %v1371_v35, %v1372_v34 }
  0xcf   : > { %v1375_v37 = vpop.permute.xlu0 %1374  ;;  %v1112_v38 = vpack.c.bf16 %v412_v36, %v404_v31  ;;  %v1380_v39 = vpop.permute.xlu1 %1379 }
  0xd0   : > { %v1377_v41 = vunpack.i.h.bf16 %v1375_v37  ;;  %v1376_v42 = vunpack.i.l.bf16 %v1375_v37  ;;  %v1382_v43 = vunpack.i.h.bf16 %v1380_v39  ;;  %v1381_v44 = vunpack.i.l.bf16 %v1380_v39 }
  0xd1   : > { %1113 = vmatpush3.bf16.msra.mxu0 %v1112_v38 }
  0xd2   : > { %v588_v46 = vsel %vm587_vm7, %v1376_v42, %v1377_v41  ;;  %v596_v52 = vsel %vm595_vm8, %v1381_v44, %v1382_v43 }
  0xd3   : > { %v1385_v48 = vpop.permute.xlu0 %1384  ;;  %v1122_v49 = vpack.c.bf16 %v588_v46, %v580_v40 }
  0xd4   : > { %v1387_v50 = vunpack.i.h.bf16 %v1385_v48  ;;  %v1386_v51 = vunpack.i.l.bf16 %v1385_v48  ;;  %725 = vmatmul.mubr.f32.vlgmr.msra.gmra.mrb[0].mxu0 %v607_v45 }
  0xd5   : > { %1123 = vmatprep.subr.bf16.mxu1 %v1122_v49  ;;  %729 = vmatprep.mubr.f32.mxu0 %v611_v47 }
  0xd6   : > { %1125 = vmatpush3.bf16.msra.mxu1 %v1122_v49  ;;  %v604_v54 = vsel %vm603_vm9, %v1386_v51, %v1387_v50 }
  0xd7   : > { %v1126_v55 = vpack.c.bf16 %v604_v54, %v596_v52 }
  0xd8   : > { %730 = vmatmul.mubr.f32.gmra.mrb[2].mxu0 %v610_v53 }
  0xd9   : > { %1127 = vmatprep.subr.bf16.mxu1 %v1126_v55 }
  0xda   : > { %1129 = vmatpush3.bf16.msra.mxu1 %v1126_v55 }
  0xdd   : > { %1080 = vmatmul.mubr.msk.f32.vlgmr.msra.gmra.mrb[0].mxu1 %vm653_vm0, %v612_v56  ;;  %vm832_vm0 = vcmask 7168  }
 0x1a7   : > { %v1047_v57 = vpop.f32.mrb[0].mxu0 }
 0x1a8   : > { %v1048_v58 = vpop.f32.mrb[1].mxu0 }
 0x1a9   : > { %v1049_v60 = vadd.f32 %v1048_v58, %v1047_v57 }
 0x1ab   : > { %v1050_v61 = vpop.f32.mrb[2].mxu0 }
 0x1ac   : > { %v1051_v62 = vpop.f32.mrb[3].mxu0 }
 0x1ad   : > { %v1052_v0 = vadd.f32 %v1051_v62, %v1050_v61 }
 0x1b0   : > { %v1081_v1 = vpop.f32.mrb[0].mxu1 }
 0x1b1   : > { %v807_v2 = vadd.f32 %v1081_v1, %v1052_v0  ;;  %v801_v3 = vpop.f32.mrb[1].mxu1 }
 0x1b2   : > { %v802_v4 = vadd.f32 %v1049_v60, %v801_v3 }
 0x1b3   : > { %811 = vst [vmem:[%s280_s10 + $0x8] sm:$0xff] %v807_v2  ;;  %v821_v5 = vsel %vm817_vm10, %v807_v2, 0.0 }
 0x1b4   : > { %810 = vst [vmem:[%s280_s10] sm:$0xff] %v802_v4  ;;  %824 = vadd.xlane.f32.xlu0 %v821_v5  ;;  %v820_v6 = vsel %vm817_vm10, %v802_v4, 0.0  ;;  %v827_v8 = vmul.f32 %v821_v5, %v821_v5 }
 0x1b5   : > { %822 = vadd.xlane.f32.xlu1 %v820_v6  ;;  %v826_v7 = vmul.f32 %v820_v6, %v820_v6 }
 0x1b8   : > { %828 = vadd.xlane.f32.xlu0 %v826_v7 }
 0x1b9   : > { %830 = vadd.xlane.f32.xlu1 %v827_v8 }
 0x241   : > { %v825_v9 = vpop.xlane.xlu0 %824 }
 0x242   : > { %v823_v10 = vpop.xlane.xlu1 %822 }
 0x245   : > { %v829_v11 = vpop.xlane.xlu0 %828 }
 0x246   : > { %v833_v12 = vsel %vm832_vm0, %v823_v10, %v829_v11  ;;  %v831_v13 = vpop.xlane.xlu1 %830 }
 0x247   : > { %836 = vst.msk [vmem:[%s289_s13] sm:$0xff] %vm835_vm11, %v833_v12  ;;  %v834_v14 = vsel %vm832_vm0, %v825_v9, %v831_v13 }
 0x248   : > { %837 = vst.msk [vmem:[%s289_s13 + $0x8] sm:$0xff] %vm835_vm11, %v834_v14 }
 0x249 PF: > { %s15_s17 = sadd.s32 1, %s1410_s17   ;;  %s1591_s15 = smov %s1406_s16 }
 0x24a   : > { %p12_p5 = scmp.ge.s32.totalorder %s15_s17, 4   ;;  %s1592_s16 = smov %s1594_s18 }
 0x24c   :  { %14 = sbr.rel (!%p12_p5) target bundleno = 2 (0x2), region = 77 }

</bundles_post_ra>
